<compile_context>
chip_gen: v7x
topology: tpu7x:2x2x1
jax: 0.10.0
libtpu: 0.0.40
codegen_flags: <defaults>
</compile_context>

<pallas_src>
import functools

import jax
import jax.numpy as jnp
from jax.experimental import pallas as pl
from jax.experimental.pallas import tpu as pltpu


def _int_pow(v, k):
    """v ** k for a static positive int k using only VPU multiplies."""
    acc = None
    base = v
    while k:
        if k & 1:
            acc = base if acc is None else acc * base
        k >>= 1
        if k:
            base = base * base
    return acc


def _focal_loss_kernel(x_ref, o_ref, *, gamma):
    # x_ref: (tm, C) tile; softmax + reduction along the last (lane) axis.
    x = x_ref[...].astype(jnp.float32)

    # Numerically stable log-softmax along dim=-1, with the negation folded in.
    m = jnp.max(x, axis=-1, keepdims=True)
    shifted = x - m
    ex = jnp.exp(shifted)
    denom = jnp.sum(ex, axis=-1, keepdims=True)          # (tm, 1)
    neg_logp = jnp.log(denom) - shifted                  # -log_softmax(x)
    loss = x * neg_logp                                  # -x * log_softmax(x)

    if gamma:  # gamma is a static Python value; gamma == 0 skips the weight
        # Per-row reciprocal: only tm elements, so exact is ~free vs the exps.
        inv_denom = 1.0 / denom                          # (tm, 1)
        one_minus_p = (denom - ex) * inv_denom           # exact >= 0, no clamp
        g = float(gamma)
        if g > 0 and g == int(g):
            w = _int_pow(one_minus_p, int(g))            # VPU multiplies only
        else:
            w = one_minus_p ** jnp.float32(g)            # exp/log pow fallback
        loss = loss * w

    # (tm, 1) column output; writeback bytes are negligible vs the input.
    o_ref[...] = jnp.sum(loss, axis=-1, keepdims=True).astype(o_ref.dtype)


_LIVE_TILES = 8  # double-buffered input tile + live f32 temporaries per step


def _hw_config():
    """Per-generation VMEM budget / per-step byte targets (conservative default)."""
    try:
        kind = jax.devices()[0].device_kind.lower()
    except Exception:  # e.g. interpret / CPU sandbox
        kind = ""
    if ("v5" in kind) or ("v6" in kind):
        # 128 MiB physical VMEM parts: HBM-bound, so push step size up and
        # raise the scoped limit explicitly (v5e default scoped is only 16 MiB).
        return dict(step_bytes=4 << 20, budget=48 << 20,
                    vmem_limit=64 << 20, force_split=False)
    # v7x (64 MiB physical / 32 MiB scoped) or unknown: stay conservative and
    # guarantee >=2 grid steps so both TensorCores get work ("parallel" grid).
    return dict(step_bytes=2 << 20, budget=20 << 20,
                vmem_limit=32 << 20, force_split=True)


def _choose_tm(n, c, itemsize, cfg):
    """Pick a row tile: big enough to amortize per-step overhead, VMEM-safe."""
    row_in = c * itemsize
    row_f32 = c * 4
    cap = max(8, cfg["budget"] // (_LIVE_TILES * row_f32))   # VMEM cap
    target = max(8, cfg["step_bytes"] // row_in)             # bytes-per-step knee
    tm = min(cap, target, 32768)
    tm = max(8, (tm // 8) * 8)
    n_up = -(-n // 8) * 8
    if cfg["force_split"] and n_up >= 16:
        half = -(-(n_up // 2) // 8) * 8                      # >=2 grid steps
        tm = min(tm, max(8, half))
    return max(8, min(tm, n_up))


def focal_loss_reduced(target, x, *, gamma=0.0, eps=1e-7, tm=None):
    """Pallas implementation of FocalLoss_reduced.forward(target, input).

    `gamma` must be a static Python number (as in the PyTorch module ctor).
    """
    del target, eps  # unused in the reference forward pass
    N, C = x.shape
    itemsize = jnp.dtype(x.dtype).itemsize
    cfg = _hw_config()
    if tm is None:
        tm = _choose_tm(N, C, itemsize, cfg)
    else:
        tm = max(8, (int(tm) // 8) * 8)

    num_tiles = pl.cdiv(N, tm)
    n_pad = num_tiles * tm
    x_p = x if n_pad == N else jnp.pad(x, ((0, n_pad - N), (0, 0)))

    cost = pl.CostEstimate(
        flops=10 * n_pad * C,
        transcendentals=n_pad * C + 2 * n_pad,
        bytes_accessed=n_pad * C * itemsize + n_pad * itemsize,
    )

    out = pl.pallas_call(
        functools.partial(_focal_loss_kernel, gamma=gamma),
        out_shape=jax.ShapeDtypeStruct((n_pad, 1), x.dtype),
        grid_spec=pl.GridSpec(
            grid=(num_tiles,),
            in_specs=[pl.BlockSpec((tm, C), lambda i: (i, 0))],
            out_specs=pl.BlockSpec((tm, 1), lambda i: (i, 0)),
        ),
        compiler_params=pltpu.CompilerParams(
            dimension_semantics=("parallel",),
            vmem_limit_bytes=cfg["vmem_limit"],
        ),
        cost_estimate=cost,
    )(x_p)

    return out[:N, 0]


def _reference(x, gamma=0.0):
    logp = jax.nn.log_softmax(x, axis=-1)
    p = jax.nn.softmax(x, axis=-1)
    return jnp.sum(-x * logp * (1.0 - p) ** gamma, axis=1)


if __name__ == "__main__":
    key = jax.random.PRNGKey(0)
    k1, k2, k3 = jax.random.split(key, 3)

    # 1) Small shape typical of the module; auto-chosen tile.
    N, C = 16, 128
    x = jax.random.normal(k1, (N, C), dtype=jnp.float32)
    target = jax.random.randint(k2, (N,), 0, C)      # unused by forward
    gamma = 2.0                                      # integer-valued -> multiply path
    out = jax.block_until_ready(focal_loss_reduced(target, x, gamma=gamma))
    assert out.shape == (N,)
    assert jnp.allclose(out, _reference(x, gamma), atol=2e-3, rtol=2e-3)

    # 2) Multi-tile grid (explicit small tile) exercising the pipelined path.
    N2 = 64
    x2 = jax.random.normal(k3, (N2, C), dtype=jnp.float32)
    out2 = jax.block_until_ready(focal_loss_reduced(None, x2, gamma=gamma, tm=8))
    assert out2.shape == (N2,)
    assert jnp.allclose(out2, _reference(x2, gamma), atol=2e-3, rtol=2e-3)

    # 3) Padded batch + non-integer gamma (float pow fallback).
    N3 = 20
    x3 = jax.random.normal(k2, (N3, C), dtype=jnp.float32)
    out3 = jax.block_until_ready(focal_loss_reduced(None, x3, gamma=0.5, tm=8))
    assert out3.shape == (N3,)
    assert jnp.allclose(out3, _reference(x3, 0.5), atol=2e-3, rtol=2e-3)

    print("KERNEL_OK")
</pallas_src>

<mosaic_0001>
module attributes {stable_mosaic.version = 11 : i64} {
  func.func @_focal_loss_kernel(%arg0: i32, %arg1: memref<8x128xf32, #tpu.memory_space<vmem>>, %arg2: memref<8x1xf32, #tpu.memory_space<vmem>>) attributes {dimension_semantics = [#tpu.dimension_semantics<parallel>], iteration_bounds = array<i64: 2>, scalar_prefetch = 0 : i64, scratch_operands = 0 : i64, tpu.core_type = #tpu.core_type<tc>, window_params = [{transform_indices = @transform_0, window_bounds = array<i64: 8, 128>}, {transform_indices = @transform_1, window_bounds = array<i64: 8, 1>}]} {
    %c0 = arith.constant 0 : index
    %c0_0 = arith.constant 0 : index
    %0 = vector.load %arg1[%c0, %c0_0] : memref<8x128xf32, #tpu.memory_space<vmem>>, vector<8x128xf32>
    %cst = arith.constant dense<0xFF800000> : vector<8xf32>
    %1 = vector.multi_reduction <maximumf>, %0, %cst [1] : vector<8x128xf32> to vector<8xf32>
    %2 = vector.shape_cast %1 : vector<8xf32> to vector<8x1xf32>
    %3 = vector.broadcast %2 : vector<8x1xf32> to vector<8x128xf32>
    %4 = arith.subf %0, %3 : vector<8x128xf32>
    %5 = math.exp %4 : vector<8x128xf32>
    %cst_1 = arith.constant dense<0.000000e+00> : vector<8xf32>
    %6 = vector.multi_reduction <add>, %5, %cst_1 [1] : vector<8x128xf32> to vector<8xf32>
    %7 = vector.shape_cast %6 : vector<8xf32> to vector<8x1xf32>
    %8 = math.log %7 : vector<8x1xf32>
    %9 = vector.broadcast %8 : vector<8x1xf32> to vector<8x128xf32>
    %10 = arith.subf %9, %4 : vector<8x128xf32>
    %11 = arith.mulf %0, %10 : vector<8x128xf32>
    %cst_2 = arith.constant 1.000000e+00 : f32
    %12 = vector.broadcast %cst_2 : f32 to vector<8x1xf32>
    %13 = arith.divf %12, %7 : vector<8x1xf32>
    %14 = vector.broadcast %7 : vector<8x1xf32> to vector<8x128xf32>
    %15 = arith.subf %14, %5 : vector<8x128xf32>
    %16 = vector.broadcast %13 : vector<8x1xf32> to vector<8x128xf32>
    %17 = arith.mulf %15, %16 : vector<8x128xf32>
    %18 = arith.mulf %17, %17 : vector<8x128xf32>
    %19 = arith.mulf %11, %18 : vector<8x128xf32>
    %cst_3 = arith.constant dense<0.000000e+00> : vector<8xf32>
    %20 = vector.multi_reduction <add>, %19, %cst_3 [1] : vector<8x128xf32> to vector<8xf32>
    %21 = vector.shape_cast %20 : vector<8xf32> to vector<8x1xf32>
    %c0_4 = arith.constant 0 : index
    %c0_5 = arith.constant 0 : index
    %22 = vector.load %arg2[%c0_4, %c0_5] : memref<8x1xf32, #tpu.memory_space<vmem>>, vector<8x1xf32>
    tpu.vector_store %arg2[%c0_4, %c0_5], %21 {strides = array<i32>} : memref<8x1xf32, #tpu.memory_space<vmem>>, vector<8x1xf32>,
    return
  }
  func.func @transform_0(%arg0: i32) -> (i32, i32) {
    %c0_i32 = arith.constant 0 : i32
    %c0_i32_0 = arith.constant 0 : i32
    return %arg0, %c0_i32 : i32, i32
  }
  func.func @transform_1(%arg0: i32) -> (i32, i32) {
    %c0_i32 = arith.constant 0 : i32
    %c0_i32_0 = arith.constant 0 : i32
    return %arg0, %c0_i32 : i32, i32
  }
}

</mosaic_0001>

<bundles_post_ra>
// kernel: tpu_custom_call.1
= control target key start
LH: loop header
LB: loop body
LE: loop exit
PB: predicated region body
PF: predicated region fallthrough
CT: control target
= control target key end

     0   :  { %6 = vsyncpa [#allocation3], 0  ;;  %s458_s0 = inlined_call_operand.hbm [shape: f32[16,128], index: 0, kind: input, shape index: {}]   ;;  %s459_s1 = inlined_call_operand.vmem [shape: f32[16,1], index: 1, kind: output, shape index: {}]  }
   0x1   :  { %8 = vsyncpa [#allocation3 + $0x1], 0  ;;  %s351_s6 = smov 0   ;;  %s353_s7 = smov 0  }
   0x2   :  { %s355_s8 = smov 0   ;;  %s357_s9 = smov 0  }
   0x3 LB: > { %s370_s10 = sadd.s32 4294967295, %s338_s9   ;;  %s373_s11 = sadd.s32 1, %s338_s9   ;;  %s338_s9 = sphi %s357_s9, %s467_s9   ;;  %s334_s8 = sphi %s355_s8, %s466_s8   ;;  %s330_s7 = sphi %s353_s7, %s465_s7   ;;  %s326_s6 = sphi %s351_s6, %s464_s6  }
   0x4   : > { %s18_s12 = ssub.s32 %s338_s9, %s373_s11  ;;  %s21_s13 = sadd.s32 1, %s334_s8 }
   0x5   : > { %p19_p0 = scmp.eq.s32.totalorder %s18_s12, 0  ;;  %p28_p1 = scmp.ne.s32.totalorder %s334_s8, %s330_s7 }
   0x6   : > { %p29_p2 = scmp.eq.s32.totalorder %s338_s9, 0  ;;  %p34_p3 = scmp.ne.s32.totalorder %s330_s7, %s326_s6 }
   0x7   : > { %s383_s14 = scalar_select %p19_p0, %s334_s8, %s21_s13  }
   0x8   : > { %p30_p4 = por %p29_p2, %p28_p1  ;;  %p35_p5 = scmp.eq.s32.totalorder %s370_s10, 0 }
   0x9   : > { %p235_p6 = scmp.lt.s32.totalorder %s338_s9, 2  ;;  %s84_s16 = sand.u32 1, %s334_s8  }
   0xa   : > { %p387_p7 = por %p35_p5, %p34_p3  ;;  %s222_s17 = sshll.u32 %s84_s16, 3 }
   0xb   : > { %s223_s18 = sshll.u32 %s338_s9, 7  ;;  %s88_s22 = scalar_lea.vmem [#allocation2], %s222_s17 }
   0xc   : > { %s396_s21 = scalar_lea.hbm %s458_s0, %s223_s18  ;;  %s95_s23 = sshll.u32 %s88_s22, 4  ;;  %s398_s23 = int_to_ptr.vmem [resolvable:$true] %s95_s23 }
   0xd   : > { %p400_p8 = pnand %p235_p6, %p30_p4  ;;  %s85_s25 = scalar_lea.sflag [#allocation3], %s84_s16 }
   0xe   : > { %s274_s26 = scalar_lea.hbm %s396_s21, 128  ;;  %s279_s29 = scalar_lea.hbm %s458_s0, 256 }
   0xf   : > { %p275_p11 = scmp.ne.s32.totalorder %s396_s21, %s274_s26  ;;  %p276_p12 = pneg %p400_p8 }
  0x10   : > { %p280_p1 = scmp.lt.u32.totalorder %s396_s21, %s458_s0  ;;  %p281_p2 = scmp.lt.u32.totalorder %s279_s29, %s274_s26 }
  0x11   : > { %p277_p13 = pnand %p276_p12, %p275_p11  ;;  %p283_p4 = scmp.lt.u32.totalorder %s274_s26, %s396_s21 }
  0x12   : > { %p282_p3 = por %p281_p2, %p280_p1 }
  0x13   : > { %p278_p0 = pneg %p277_p13 }
  0x14   : > { %p284_p5 = por %p283_p4, %p282_p3 }
  0x16   : > { %p285_p6 = pnand %p284_p5, %p278_p0 }
  0x18   : > { %288 = shalt.err (!%p285_p6)
}
  0x19   : > { %s289_s3 = scalar_lea.vmem %s398_s23, 128  ;;  %s340_s4 = smov [#allocation2]  }
  0x1a   : > { %p290_p11 = scmp.ne.s32.totalorder %s398_s23, %s289_s3  ;;  %s294_s5 = sshll.u32 %s340_s4, 4  ;;  %s295_s5 = int_to_ptr.vmem [resolvable:$false] %s294_s5 }
  0x1b   : > { %s296_s6 = scalar_lea.vmem %s295_s5, 256  ;;  %p297_p10 = scmp.lt.s32.totalorder %s398_s23, %s295_s5 }
  0x1c   : > { %p292_p13 = pnand %p290_p11, %p276_p12  ;;  %p298_p1 = scmp.lt.s32.totalorder %s296_s6, %s289_s3 }
  0x1e   : > { %p293_p9 = pneg %p292_p13  ;;  %p299_p2 = por %p298_p1, %p297_p10 }
  0x20   : > { %p300_p3 = pnand %p299_p2, %p293_p9 }
  0x22   : > { %303 = shalt.err (!%p300_p3)
}
  0x23   : > { %234 = dma.hbm_to_vmem [thread:$0]  (!%p400_p8), %s396_s21, 128, %s398_s23, %s85_s25  }
  0x24   : > { %p462_p0 = scmp.lt.s32.totalorder %s338_s9, 3  ;;  %p463_p4 = scmp.ge.s32.totalorder %s338_s9, 1 }
  0x26   : > { %p101_p12 = pnand %p463_p4, %p462_p0 }
  0x27   : > { %s106_s12 = sand.u32 (!%p101_p12), 1, %s330_s7  }
  0x28   : > { %104 = sbr.rel (%p101_p12) target bundleno = 510 (0x1fe), region = 24  ;;  %s225_s13 = sshll.u32 (!%p101_p12), %s106_s12, 3 }
  0x29   : > { %s107_s16 = scalar_lea.sflag (!%p101_p12), [#allocation3], %s106_s12  ;;  %s110_s17 = scalar_lea.vmem (!%p101_p12), [#allocation2], %s225_s13 }
  0x2f   : > { %321 = dma.done.wait (%p387_p7), %s107_s16, 128  }
  0x30   : > { %323 = vsyncadd (%p387_p7), %s107_s16, 4294967168  ;;  %v132_v0 = vld [vmem:[%s110_s17] sm:$0xff]  ;;  %p128_p7 = scmp.lt.s32.totalorder %s370_s10, 1  ;;  %vm152_vm0 = vcmask 7168  }
  0x31   : > { %133 = vmax.xlane.f32.xlu0 %v132_v0 }
  0x32   : > { %s469_s10 = smov (!%p128_p7, %s370_s10), 1 }
  0x33   : > { %s226_s9 = sshll.u32 %s469_s10, 3 }
  0x34   : > { %s131_s19 = scalar_lea.vmem %s459_s1, %s226_s9 }
  0xbe   : > { %v134_v1 = vpop.xlane.xlu0 %133 }
  0xbf   : > { %v135_v2 = vsub.f32 %v132_v0, %v134_v1 }
  0xc1   : > { %v136_v3 = vmul.f32 1.442695, %v135_v2 }
  0xc3   : > { %268 = vpow2.f32 %v136_v3 }
  0xcd   : > { %v269_v4 = vpop.eup %268 }
  0xce   : > { %138 = vadd.xlane.f32.xlu0 %v269_v4 }
 0x15b   : > { %v139_v5 = vpop.xlane.xlu0 %138 }
 0x15c   : > { %270 = vlog2.f32 %v139_v5  ;;  %v146_v7 = vsub.f32 %v139_v5, %v269_v4 }
 0x15d   : > { %272 = vrcp.f32 %v139_v5 }
 0x166   : > { %v271_v6 = vpop.eup %270 }
 0x167   : > { %v273_v8 = vpop.eup %272  ;;  %v141_v9 = vmul.f32 0.6931472, %v271_v6 }
 0x168   : > { %v147_v10 = vmul.f32 %v273_v8, %v146_v7 }
 0x169   : > { %v142_v11 = vsub.f32 %v141_v9, %v135_v2 }
 0x16a   : > { %v148_v13 = vmul.f32 %v147_v10, %v147_v10 }
 0x16b   : > { %v143_v12 = vmul.f32 %v142_v11, %v132_v0 }
 0x16d   : > { %v149_v14 = vmul.f32 %v148_v13, %v143_v12 }
 0x16f   : > { %150 = vadd.xlane.f32.xlu1 %v149_v14 }
 0x1fc   : > { %v151_v15 = vpop.xlane.xlu1 %150 }
 0x1fd   : > { %153 = vst.msk [vmem:[%s131_s19] sm:$0xff] %vm152_vm0, %v151_v15 }
 0x1fe PF: > { %p11_p8 = scmp.ge.s32.totalorder %s373_s11, 4   ;;  %s464_s6 = smov %s330_s7 }
 0x1ff   : > { %s465_s7 = smov %s334_s8  ;;  %s466_s8 = smov %s383_s14 }
 0x200   : > { %s467_s9 = smov %s373_s11  ;;  %13 = sbr.rel (!%p11_p8) target bundleno = 3 (0x3), region = 64 }
 0x207   :  { %173 = vsyncpa [#allocation3], 1 }
 0x208   :  { %175 = vsyncpa [#allocation3 + $0x1], 1 }

</bundles_post_ra>
